<compile_context>
chip_gen: v7x
topology: tpu7x:2x2x1
jax: 0.10.0
libtpu: 0.0.40
codegen_flags: <defaults>
</compile_context>

<pallas_src>
import functools

import numpy as np
import jax
import jax.numpy as jnp
from jax.experimental import pallas as pl
from jax.experimental.pallas import tpu as pltpu

LANE = 128       # TPU lane width; padded channel dims
NEG = -1e30      # bias for padded softmax lanes


def _ru8(n):
    return ((n + 7) // 8) * 8


def _make_fsmn_kernel(n_layers, lorder, lstride, T, Tc_pad, Tc,
                      conv_base, conv_block):
    """Fused per-batch kernel:
       folded in-linear -> relu ->
       n_layers x (LinearTransform -> FSMNBlock (causal depthwise FIR + cache)
                   -> AffineTransform -> relu) ->
       folded out-linear -> softmax."""
    C = LANE
    off = Tc_pad - Tc            # leading (never-read) pad rows of the cache

    def kernel(x_ref, cache_ref, win_ref, wmat_ref, wvec_ref,
               out_ref, newcache_ref):
        # x_ref:       (T, D)                f32
        # cache_ref:   (n_layers, Tc_pad, C) f32   (aliased with newcache_ref)
        # win_ref:     (D, C)                bf16  (folded in_linear1@in_linear2)
        # wmat_ref:    (NM, C, C)            bf16  (per-layer lin/aff + folded out)
        # wvec_ref:    (NV, C)               f32   (biases + FIR taps)
        wv = wvec_ref[...]

        def mm(h, m):
            return jnp.dot(h.astype(jnp.bfloat16), wmat_ref[m],
                           preferred_element_type=jnp.float32)

        # folded in_linear1 -> in_linear2, then ReLU (dropout is a no-op)
        h = jnp.dot(x_ref[...].astype(jnp.bfloat16), win_ref[...],
                    preferred_element_type=jnp.float32) + wv[0:1, :]
        h = jnp.maximum(h, 0.0)

        for li in range(n_layers):
            # LinearTransform (bias=False)
            x1 = mm(h, 2 * li)                       # (T, C)
            cache_l = cache_ref[li]                  # (Tc_pad, C)
            # streaming FSMN: y = cat(cache, x1) along time (both pieces are
            # 8-sublane aligned -> cheap aligned stack).
            y = jnp.concatenate([cache_l, x1], axis=0)   # (Tc_pad + T, C)
            # updated cache slab = last Tc_pad frames; its last Tc rows are
            # the real cache, the leading `off` rows are never read.
            newcache_ref[li] = y[T:, :]
            # depthwise causal FIR (Conv2d groups=P, kernel [lorder,1],
            # dilation [lstride,1], bias=False); tap lorder-1 is the current
            # frame and reads x1 directly.
            cb = conv_base + li * conv_block
            taps = wv[cb:cb + lorder, :]             # (lorder, C), f32
            conv = x1 * taps[lorder - 1:lorder, :]
            for k in range(lorder - 1):
                s = off + k * lstride
                conv = conv + y[s:s + T, :] * taps[k:k + 1, :]
            x2 = x1 + conv                           # x_per + y_left
            # AffineTransform + ReLU
            h = mm(x2, 2 * li + 1) + wv[1 + li:2 + li, :]
            h = jnp.maximum(h, 0.0)

        # folded out_linear1 -> out_linear2, softmax(dim=-1); padded logit
        # lanes carry -1e30 bias so the 128-lane softmax equals the O-lane one.
        z = mm(h, 2 * n_layers) + wv[1 + n_layers:2 + n_layers, :]
        z = z - jnp.max(z, axis=-1, keepdims=True)
        e = jnp.exp(z)
        out_ref[...] = e * pl.reciprocal(jnp.sum(e, axis=-1, keepdims=True),
                                         approx=True)

    return kernel


def _pad_mat(w):
    assert w.shape[0] <= LANE and w.shape[1] <= LANE, \
        "channel dims > 128 need 256-lane or K-tiled packing"  # TODO(synk)
    out = jnp.zeros((LANE, LANE), jnp.float32)
    return out.at[:w.shape[0], :w.shape[1]].set(w.astype(jnp.float32))


def pack_params(params, n_layers, lorder):
    """Fold the two linear pairs, pack matmul weights into bf16 slabs and all
    biases / FIR taps into one f32 (NV, 128) slab.  Done once per model."""
    w_in12 = params["w_in1"] @ params["w_in2"]                       # (D, L)
    b_in12 = params["b_in1"] @ params["w_in2"] + params["b_in2"]     # (1, L)
    w_out12 = params["w_out1"] @ params["w_out2"]                    # (L, O)
    b_out12 = params["b_out1"] @ params["w_out2"] + params["b_out2"]  # (1, O)

    D, L = w_in12.shape
    O = w_out12.shape[1]

    win = jnp.zeros((D, LANE), jnp.float32)
    win = win.at[:, :L].set(w_in12).astype(jnp.bfloat16)             # (D, 128)

    mats = []
    for lp in params["layers"]:
        mats += [lp["w_lin"], lp["w_aff"]]
    mats += [w_out12]
    wmat = jnp.stack([_pad_mat(m) for m in mats], axis=0).astype(jnp.bfloat16)

    bias_rows = _ru8(2 + n_layers)
    conv_block = _ru8(lorder)
    NV = bias_rows + n_layers * conv_block
    wvec = jnp.zeros((NV, LANE), jnp.float32)
    wvec = wvec.at[0, :L].set(b_in12.reshape(-1))
    for li, lp in enumerate(params["layers"]):
        wvec = wvec.at[1 + li, :lp["b_aff"].shape[-1]].set(lp["b_aff"].reshape(-1))
    wvec = wvec.at[1 + n_layers, :].set(NEG)                         # pad logit lanes
    wvec = wvec.at[1 + n_layers, :O].set(b_out12.reshape(-1))
    for li, lp in enumerate(params["layers"]):
        r = bias_rows + li * conv_block
        wvec = wvec.at[r:r + lorder, :lp["w_conv"].shape[-1]].set(lp["w_conv"])
    return win, wmat, wvec, bias_rows, conv_block


def init_cache_slab(caches, Tc_pad):
    """Build the packed streaming cache slab (B, n_layers, Tc_pad, 128) once."""
    n_layers = len(caches)
    B, Tc, P = caches[0].shape
    slab = jnp.zeros((B, n_layers, Tc_pad, LANE), jnp.float32)
    return slab.at[:, :, Tc_pad - Tc:, :P].set(jnp.stack(caches, axis=1))


def caches_from_slab(slab, Tc, P):
    """Extract the real (B, Tc, P) cache tensors (for inspection / tests)."""
    n_layers = slab.shape[1]
    Tc_pad = slab.shape[2]
    return [slab[:, li, Tc_pad - Tc:, :P] for li in range(n_layers)]


@functools.partial(jax.jit, static_argnames=(
    "n_layers", "lorder", "lstride", "Tc", "conv_base", "conv_block", "out_dim"))
def fsmn_export_forward(x, cache_slab, win, wmat, wvec, *,
                        n_layers, lorder, lstride, Tc,
                        conv_base, conv_block, out_dim):
    """x: (B, T, D) f32; cache_slab: (B, n_layers, Tc_pad, 128) f32 (packed).
    Returns (probs (B, T, O), new_cache_slab (same packed format))."""
    B, T, D = x.shape
    Tc_pad = cache_slab.shape[2]
    NM = wmat.shape[0]
    NV = wvec.shape[0]

    kernel = _make_fsmn_kernel(n_layers, lorder, lstride, T, Tc_pad, Tc,
                               conv_base, conv_block)

    probs_pad, new_slab = pl.pallas_call(
        kernel,
        grid=(B,),   # batch on a "parallel" axis: v7x splits it over 2 cores
        in_specs=[
            pl.BlockSpec((None, T, D), lambda b: (b, 0, 0)),
            pl.BlockSpec((None, n_layers, Tc_pad, LANE), lambda b: (b, 0, 0, 0)),
            pl.BlockSpec((D, LANE), lambda b: (0, 0)),
            pl.BlockSpec((NM, LANE, LANE), lambda b: (0, 0, 0)),
            pl.BlockSpec((NV, LANE), lambda b: (0, 0)),
        ],
        out_specs=(
            pl.BlockSpec((None, T, LANE), lambda b: (b, 0, 0)),
            pl.BlockSpec((None, n_layers, Tc_pad, LANE), lambda b: (b, 0, 0, 0)),
        ),
        out_shape=(
            jax.ShapeDtypeStruct((B, T, LANE), jnp.float32),
            jax.ShapeDtypeStruct((B, n_layers, Tc_pad, LANE), jnp.float32),
        ),
        input_output_aliases={1: 1},   # in-place streaming cache update
        compiler_params=pltpu.CompilerParams(
            dimension_semantics=("parallel",),
            vmem_limit_bytes=32 * 1024 * 1024,
        ),
    )(x, cache_slab, win, wmat, wvec)

    return probs_pad[:, :, :out_dim], new_slab


def reference_forward(x, caches, params, *, lorder, lstride):
    """Plain-JAX f32 reference mirroring PyTorch FSMNExport.forward semantics."""
    h = x @ params["w_in1"] + params["b_in1"]
    h = h @ params["w_in2"] + params["b_in2"]
    h = jnp.maximum(h, 0.0)
    T = x.shape[1]
    out_caches = []
    for li, c in enumerate(caches):
        lp = params["layers"][li]
        x1 = h @ lp["w_lin"]
        y = jnp.concatenate([c, x1], axis=1)
        Tc = c.shape[1]
        out_caches.append(y[:, y.shape[1] - Tc:, :])
        conv = jnp.zeros_like(x1)
        for k in range(lorder):
            conv = conv + y[:, k * lstride:k * lstride + T, :] * lp["w_conv"][k][None, None, :]
        x2 = x1 + conv
        h = jnp.maximum(x2 @ lp["w_aff"] + lp["b_aff"], 0.0)
    z = h @ params["w_out1"] + params["b_out1"]
    z = z @ params["w_out2"] + params["b_out2"]
    return jax.nn.softmax(z, axis=-1), out_caches


def init_params(key, D, A1, L, P, A2, O, n_layers, lorder):
    """Deterministic synthetic parameters (shapes follow the module __init__)."""
    keys = list(jax.random.split(key, 8 + 4 * n_layers))
    s = 0.1

    def nrm(k, shape):
        return (s * jax.random.normal(k, shape)).astype(jnp.float32)

    ki = iter(keys)
    params = {
        "w_in1": nrm(next(ki), (D, A1)),  "b_in1": nrm(next(ki), (1, A1)),
        "w_in2": nrm(next(ki), (A1, L)),  "b_in2": nrm(next(ki), (1, L)),
        "layers": [],
    }
    for _ in range(n_layers):
        params["layers"].append({
            "w_lin":  nrm(next(ki), (L, P)),        # LinearTransform (no bias)
            "w_conv": nrm(next(ki), (lorder, P)),   # depthwise conv (P,1,lorder,1)->(lorder,P)
            "w_aff":  nrm(next(ki), (P, L)),        # AffineTransform weight
            "b_aff":  nrm(next(ki), (1, L)),        # AffineTransform bias
        })
    params["w_out1"] = nrm(next(ki), (L, A2));  params["b_out1"] = nrm(next(ki), (1, A2))
    params["w_out2"] = nrm(next(ki), (A2, O));  params["b_out2"] = nrm(next(ki), (1, O))
    return params


if __name__ == "__main__":
    # Small shapes consistent with the module structure.
    B, T = 2, 8
    D, A1, L, P, A2, O = 32, 24, 32, 16, 24, 8   # input/in-affine/linear/proj/out-affine/output
    n_layers, lorder, lstride = 2, 4, 1          # rorder = 0 (VAD config)
    Tc = (lorder - 1) * lstride
    Tc_pad = _ru8(Tc)

    key = jax.random.PRNGKey(0)
    k_x, k_x2, k_c, k_p = jax.random.split(key, 4)
    x = jax.random.normal(k_x, (B, T, D), dtype=jnp.float32)
    x_next = jax.random.normal(k_x2, (B, T, D), dtype=jnp.float32)
    cache_keys = jax.random.split(k_c, n_layers)
    caches = [(0.1 * jax.random.normal(cache_keys[i], (B, Tc, P))).astype(jnp.float32)
              for i in range(n_layers)]
    params = init_params(k_p, D, A1, L, P, A2, O, n_layers, lorder)

    # one-time packing (weights + initial streaming cache slab)
    win, wmat, wvec, conv_base, conv_block = pack_params(params, n_layers, lorder)
    cache_slab = init_cache_slab(caches, Tc_pad)

    run = functools.partial(fsmn_export_forward,
                            n_layers=n_layers, lorder=lorder, lstride=lstride,
                            Tc=Tc, conv_base=conv_base, conv_block=conv_block,
                            out_dim=O)

    # chunk 1
    probs, cache_slab1 = run(x, cache_slab, win, wmat, wvec)
    jax.block_until_ready(probs)
    jax.block_until_ready(cache_slab1)
    out_caches = caches_from_slab(cache_slab1, Tc, P)

    ref_probs, ref_caches = reference_forward(x, caches, params,
                                              lorder=lorder, lstride=lstride)
    # bf16 MXU weights + approx-reciprocal softmax -> loosened tolerances
    assert np.allclose(np.asarray(probs), np.asarray(ref_probs), rtol=5e-2, atol=1.5e-2)
    for c, rc in zip(out_caches, ref_caches):
        assert np.allclose(np.asarray(c), np.asarray(rc), rtol=5e-2, atol=1e-2)
    assert np.allclose(np.asarray(probs).sum(-1), 1.0, atol=5e-3)

    # chunk 2: streaming continuation through the packed cache slab (no repack)
    probs2, cache_slab2 = run(x_next, cache_slab1, win, wmat, wvec)
    jax.block_until_ready(probs2)
    out_caches2 = caches_from_slab(cache_slab2, Tc, P)
    ref_probs2, ref_caches2 = reference_forward(x_next, ref_caches, params,
                                                lorder=lorder, lstride=lstride)
    assert np.allclose(np.asarray(probs2), np.asarray(ref_probs2), rtol=5e-2, atol=1.5e-2)
    for c, rc in zip(out_caches2, ref_caches2):
        assert np.allclose(np.asarray(c), np.asarray(rc), rtol=5e-2, atol=1e-2)

    print("KERNEL_OK")
</pallas_src>

<mosaic_0001>
module attributes {stable_mosaic.version = 11 : i64} {
  func.func @kernel(%arg0: i32, %arg1: memref<1x8x32xf32, #tpu.memory_space<vmem>>, %arg2: memref<1x2x8x128xf32, #tpu.memory_space<vmem>>, %arg3: memref<32x128xbf16, #tpu.memory_space<vmem>>, %arg4: memref<5x128x128xbf16, #tpu.memory_space<vmem>>, %arg5: memref<24x128xf32, #tpu.memory_space<vmem>>, %arg6: memref<1x8x128xf32, #tpu.memory_space<vmem>>, %arg7: memref<1x2x8x128xf32, #tpu.memory_space<vmem>>) attributes {dimension_semantics = [#tpu.dimension_semantics<parallel>], iteration_bounds = array<i64: 2>, scalar_prefetch = 0 : i64, scratch_operands = 0 : i64, tpu.core_type = #tpu.core_type<tc>, window_params = [{transform_indices = @transform_0, window_bounds = array<i64: 1, 8, 32>}, {transform_indices = @transform_1, window_bounds = array<i64: 1, 2, 8, 128>}, {pipeline_mode = #tpu.pipeline_mode<synchronous>, transform_indices = @transform_2, window_bounds = array<i64: 32, 128>}, {pipeline_mode = #tpu.pipeline_mode<synchronous>, transform_indices = @transform_3, window_bounds = array<i64: 5, 128, 128>}, {pipeline_mode = #tpu.pipeline_mode<synchronous>, transform_indices = @transform_4, window_bounds = array<i64: 24, 128>}, {transform_indices = @transform_5, window_bounds = array<i64: 1, 8, 128>}, {transform_indices = @transform_6, window_bounds = array<i64: 1, 2, 8, 128>}]} {
    %c0 = arith.constant 0 : index
    %c0_0 = arith.constant 0 : index
    %0 = vector.load %arg5[%c0, %c0_0] : memref<24x128xf32, #tpu.memory_space<vmem>>, vector<24x128xf32>
    %c0_1 = arith.constant 0 : index
    %c0_2 = arith.constant 0 : index
    %c0_3 = arith.constant 0 : index
    %1 = vector.load %arg1[%c0_1, %c0_2, %c0_3] : memref<1x8x32xf32, #tpu.memory_space<vmem>>, vector<1x8x32xf32>
    %2 = vector.shape_cast %1 : vector<1x8x32xf32> to vector<8x32xf32>
    %3 = arith.truncf %2 : vector<8x32xf32> to vector<8x32xbf16>
    %c0_4 = arith.constant 0 : index
    %c0_5 = arith.constant 0 : index
    %4 = vector.load %arg3[%c0_4, %c0_5] : memref<32x128xbf16, #tpu.memory_space<vmem>>, vector<32x128xbf16>
    %cst = arith.constant dense<0.000000e+00> : vector<8x128xf32>
    %5 = tpu.matmul %3, %4, %cst {dimension_numbers = #tpu.dot_dimension_numbers<[1], [0], [0], [1], [0, 0, 1, 1], [], []>} : vector<8x32xbf16>, vector<32x128xbf16>, vector<8x128xf32> -> vector<8x128xf32>
    %6 = vector.extract_strided_slice %0 {offsets = [0, 0], sizes = [1, 128], strides = [1, 1]} : vector<24x128xf32> to vector<1x128xf32>
    %7 = vector.broadcast %6 : vector<1x128xf32> to vector<8x128xf32>
    %8 = arith.addf %5, %7 : vector<8x128xf32>
    %cst_6 = arith.constant 0.000000e+00 : f32
    %9 = vector.broadcast %cst_6 : f32 to vector<8x128xf32>
    %10 = arith.maximumf %8, %9 : vector<8x128xf32>
    %11 = arith.truncf %10 : vector<8x128xf32> to vector<8x128xbf16>
    %c0_7 = arith.constant 0 : index
    %c0_8 = arith.constant 0 : index
    %c0_9 = arith.constant 0 : index
    %12 = vector.load %arg4[%c0_7, %c0_8, %c0_9] : memref<5x128x128xbf16, #tpu.memory_space<vmem>>, vector<1x128x128xbf16>
    %13 = vector.shape_cast %12 : vector<1x128x128xbf16> to vector<128x128xbf16>
    %cst_10 = arith.constant dense<0.000000e+00> : vector<8x128xf32>
    %14 = tpu.matmul %11, %13, %cst_10 {dimension_numbers = #tpu.dot_dimension_numbers<[1], [0], [0], [1], [0, 0, 1, 1], [], []>} : vector<8x128xbf16>, vector<128x128xbf16>, vector<8x128xf32> -> vector<8x128xf32>
    %c0_11 = arith.constant 0 : index
    %c0_12 = arith.constant 0 : index
    %c0_13 = arith.constant 0 : index
    %c0_14 = arith.constant 0 : index
    %15 = vector.load %arg2[%c0_11, %c0_12, %c0_13, %c0_14] : memref<1x2x8x128xf32, #tpu.memory_space<vmem>>, vector<1x1x8x128xf32>
    %16 = vector.shape_cast %15 : vector<1x1x8x128xf32> to vector<8x128xf32>
    %17 = tpu.concatenate %16, %14 in 0 : vector<8x128xf32>, vector<8x128xf32> -> vector<16x128xf32>
    %18 = vector.extract_strided_slice %17 {offsets = [8, 0], sizes = [8, 128], strides = [1, 1]} : vector<16x128xf32> to vector<8x128xf32>
    %c0_15 = arith.constant 0 : index
    %c0_16 = arith.constant 0 : index
    %c0_17 = arith.constant 0 : index
    %c0_18 = arith.constant 0 : index
    %19 = vector.load %arg7[%c0_15, %c0_16, %c0_17, %c0_18] : memref<1x2x8x128xf32, #tpu.memory_space<vmem>>, vector<1x1x8x128xf32>
    %20 = vector.shape_cast %19 : vector<1x1x8x128xf32> to vector<8x128xf32>
    %21 = vector.shape_cast %18 : vector<8x128xf32> to vector<1x1x8x128xf32>
    tpu.vector_store %arg7[%c0_15, %c0_16, %c0_17, %c0_18], %21 {strides = array<i32>} : memref<1x2x8x128xf32, #tpu.memory_space<vmem>>, vector<1x1x8x128xf32>,
    %22 = vector.extract_strided_slice %0 {offsets = [8, 0], sizes = [4, 128], strides = [1, 1]} : vector<24x128xf32> to vector<4x128xf32>
    %23 = vector.extract_strided_slice %22 {offsets = [3, 0], sizes = [1, 128], strides = [1, 1]} : vector<4x128xf32> to vector<1x128xf32>
    %24 = vector.broadcast %23 : vector<1x128xf32> to vector<8x128xf32>
    %25 = arith.mulf %14, %24 : vector<8x128xf32>
    %26 = vector.extract_strided_slice %17 {offsets = [5, 0], sizes = [8, 128], strides = [1, 1]} : vector<16x128xf32> to vector<8x128xf32>
    %27 = vector.extract_strided_slice %22 {offsets = [0, 0], sizes = [1, 128], strides = [1, 1]} : vector<4x128xf32> to vector<1x128xf32>
    %28 = vector.broadcast %27 : vector<1x128xf32> to vector<8x128xf32>
    %29 = arith.mulf %26, %28 : vector<8x128xf32>
    %30 = arith.addf %25, %29 : vector<8x128xf32>
    %31 = vector.extract_strided_slice %17 {offsets = [6, 0], sizes = [8, 128], strides = [1, 1]} : vector<16x128xf32> to vector<8x128xf32>
    %32 = vector.extract_strided_slice %22 {offsets = [1, 0], sizes = [1, 128], strides = [1, 1]} : vector<4x128xf32> to vector<1x128xf32>
    %33 = vector.broadcast %32 : vector<1x128xf32> to vector<8x128xf32>
    %34 = arith.mulf %31, %33 : vector<8x128xf32>
    %35 = arith.addf %30, %34 : vector<8x128xf32>
    %36 = vector.extract_strided_slice %17 {offsets = [7, 0], sizes = [8, 128], strides = [1, 1]} : vector<16x128xf32> to vector<8x128xf32>
    %37 = vector.extract_strided_slice %22 {offsets = [2, 0], sizes = [1, 128], strides = [1, 1]} : vector<4x128xf32> to vector<1x128xf32>
    %38 = vector.broadcast %37 : vector<1x128xf32> to vector<8x128xf32>
    %39 = arith.mulf %36, %38 : vector<8x128xf32>
    %40 = arith.addf %35, %39 : vector<8x128xf32>
    %41 = arith.addf %14, %40 : vector<8x128xf32>
    %42 = arith.truncf %41 : vector<8x128xf32> to vector<8x128xbf16>
    %c1 = arith.constant 1 : index
    %c0_19 = arith.constant 0 : index
    %c0_20 = arith.constant 0 : index
    %43 = vector.load %arg4[%c1, %c0_19, %c0_20] : memref<5x128x128xbf16, #tpu.memory_space<vmem>>, vector<1x128x128xbf16>
    %44 = vector.shape_cast %43 : vector<1x128x128xbf16> to vector<128x128xbf16>
    %cst_21 = arith.constant dense<0.000000e+00> : vector<8x128xf32>
    %45 = tpu.matmul %42, %44, %cst_21 {dimension_numbers = #tpu.dot_dimension_numbers<[1], [0], [0], [1], [0, 0, 1, 1], [], []>} : vector<8x128xbf16>, vector<128x128xbf16>, vector<8x128xf32> -> vector<8x128xf32>
    %46 = vector.extract_strided_slice %0 {offsets = [1, 0], sizes = [1, 128], strides = [1, 1]} : vector<24x128xf32> to vector<1x128xf32>
    %47 = vector.broadcast %46 : vector<1x128xf32> to vector<8x128xf32>
    %48 = arith.addf %45, %47 : vector<8x128xf32>
    %cst_22 = arith.constant 0.000000e+00 : f32
    %49 = vector.broadcast %cst_22 : f32 to vector<8x128xf32>
    %50 = arith.maximumf %48, %49 : vector<8x128xf32>
    %51 = arith.truncf %50 : vector<8x128xf32> to vector<8x128xbf16>
    %c2 = arith.constant 2 : index
    %c0_23 = arith.constant 0 : index
    %c0_24 = arith.constant 0 : index
    %52 = vector.load %arg4[%c2, %c0_23, %c0_24] : memref<5x128x128xbf16, #tpu.memory_space<vmem>>, vector<1x128x128xbf16>
    %53 = vector.shape_cast %52 : vector<1x128x128xbf16> to vector<128x128xbf16>
    %cst_25 = arith.constant dense<0.000000e+00> : vector<8x128xf32>
    %54 = tpu.matmul %51, %53, %cst_25 {dimension_numbers = #tpu.dot_dimension_numbers<[1], [0], [0], [1], [0, 0, 1, 1], [], []>} : vector<8x128xbf16>, vector<128x128xbf16>, vector<8x128xf32> -> vector<8x128xf32>
    %c0_26 = arith.constant 0 : index
    %c1_27 = arith.constant 1 : index
    %c0_28 = arith.constant 0 : index
    %c0_29 = arith.constant 0 : index
    %55 = vector.load %arg2[%c0_26, %c1_27, %c0_28, %c0_29] : memref<1x2x8x128xf32, #tpu.memory_space<vmem>>, vector<1x1x8x128xf32>
    %56 = vector.shape_cast %55 : vector<1x1x8x128xf32> to vector<8x128xf32>
    %57 = tpu.concatenate %56, %54 in 0 : vector<8x128xf32>, vector<8x128xf32> -> vector<16x128xf32>
    %58 = vector.extract_strided_slice %57 {offsets = [8, 0], sizes = [8, 128], strides = [1, 1]} : vector<16x128xf32> to vector<8x128xf32>
    %c0_30 = arith.constant 0 : index
    %c1_31 = arith.constant 1 : index
    %c0_32 = arith.constant 0 : index
    %c0_33 = arith.constant 0 : index
    %59 = vector.load %arg7[%c0_30, %c1_31, %c0_32, %c0_33] : memref<1x2x8x128xf32, #tpu.memory_space<vmem>>, vector<1x1x8x128xf32>
    %60 = vector.shape_cast %59 : vector<1x1x8x128xf32> to vector<8x128xf32>
    %61 = vector.shape_cast %58 : vector<8x128xf32> to vector<1x1x8x128xf32>
    tpu.vector_store %arg7[%c0_30, %c1_31, %c0_32, %c0_33], %61 {strides = array<i32>} : memref<1x2x8x128xf32, #tpu.memory_space<vmem>>, vector<1x1x8x128xf32>,
    %62 = vector.extract_strided_slice %0 {offsets = [16, 0], sizes = [4, 128], strides = [1, 1]} : vector<24x128xf32> to vector<4x128xf32>
    %63 = vector.extract_strided_slice %62 {offsets = [3, 0], sizes = [1, 128], strides = [1, 1]} : vector<4x128xf32> to vector<1x128xf32>
    %64 = vector.broadcast %63 : vector<1x128xf32> to vector<8x128xf32>
    %65 = arith.mulf %54, %64 : vector<8x128xf32>
    %66 = vector.extract_strided_slice %57 {offsets = [5, 0], sizes = [8, 128], strides = [1, 1]} : vector<16x128xf32> to vector<8x128xf32>
    %67 = vector.extract_strided_slice %62 {offsets = [0, 0], sizes = [1, 128], strides = [1, 1]} : vector<4x128xf32> to vector<1x128xf32>
    %68 = vector.broadcast %67 : vector<1x128xf32> to vector<8x128xf32>
    %69 = arith.mulf %66, %68 : vector<8x128xf32>
    %70 = arith.addf %65, %69 : vector<8x128xf32>
    %71 = vector.extract_strided_slice %57 {offsets = [6, 0], sizes = [8, 128], strides = [1, 1]} : vector<16x128xf32> to vector<8x128xf32>
    %72 = vector.extract_strided_slice %62 {offsets = [1, 0], sizes = [1, 128], strides = [1, 1]} : vector<4x128xf32> to vector<1x128xf32>
    %73 = vector.broadcast %72 : vector<1x128xf32> to vector<8x128xf32>
    %74 = arith.mulf %71, %73 : vector<8x128xf32>
    %75 = arith.addf %70, %74 : vector<8x128xf32>
    %76 = vector.extract_strided_slice %57 {offsets = [7, 0], sizes = [8, 128], strides = [1, 1]} : vector<16x128xf32> to vector<8x128xf32>
    %77 = vector.extract_strided_slice %62 {offsets = [2, 0], sizes = [1, 128], strides = [1, 1]} : vector<4x128xf32> to vector<1x128xf32>
    %78 = vector.broadcast %77 : vector<1x128xf32> to vector<8x128xf32>
    %79 = arith.mulf %76, %78 : vector<8x128xf32>
    %80 = arith.addf %75, %79 : vector<8x128xf32>
    %81 = arith.addf %54, %80 : vector<8x128xf32>
    %82 = arith.truncf %81 : vector<8x128xf32> to vector<8x128xbf16>
    %c3 = arith.constant 3 : index
    %c0_34 = arith.constant 0 : index
    %c0_35 = arith.constant 0 : index
    %83 = vector.load %arg4[%c3, %c0_34, %c0_35] : memref<5x128x128xbf16, #tpu.memory_space<vmem>>, vector<1x128x128xbf16>
    %84 = vector.shape_cast %83 : vector<1x128x128xbf16> to vector<128x128xbf16>
    %cst_36 = arith.constant dense<0.000000e+00> : vector<8x128xf32>
    %85 = tpu.matmul %82, %84, %cst_36 {dimension_numbers = #tpu.dot_dimension_numbers<[1], [0], [0], [1], [0, 0, 1, 1], [], []>} : vector<8x128xbf16>, vector<128x128xbf16>, vector<8x128xf32> -> vector<8x128xf32>
    %86 = vector.extract_strided_slice %0 {offsets = [2, 0], sizes = [1, 128], strides = [1, 1]} : vector<24x128xf32> to vector<1x128xf32>
    %87 = vector.broadcast %86 : vector<1x128xf32> to vector<8x128xf32>
    %88 = arith.addf %85, %87 : vector<8x128xf32>
    %cst_37 = arith.constant 0.000000e+00 : f32
    %89 = vector.broadcast %cst_37 : f32 to vector<8x128xf32>
    %90 = arith.maximumf %88, %89 : vector<8x128xf32>
    %91 = arith.truncf %90 : vector<8x128xf32> to vector<8x128xbf16>
    %c4 = arith.constant 4 : index
    %c0_38 = arith.constant 0 : index
    %c0_39 = arith.constant 0 : index
    %92 = vector.load %arg4[%c4, %c0_38, %c0_39] : memref<5x128x128xbf16, #tpu.memory_space<vmem>>, vector<1x128x128xbf16>
    %93 = vector.shape_cast %92 : vector<1x128x128xbf16> to vector<128x128xbf16>
    %cst_40 = arith.constant dense<0.000000e+00> : vector<8x128xf32>
    %94 = tpu.matmul %91, %93, %cst_40 {dimension_numbers = #tpu.dot_dimension_numbers<[1], [0], [0], [1], [0, 0, 1, 1], [], []>} : vector<8x128xbf16>, vector<128x128xbf16>, vector<8x128xf32> -> vector<8x128xf32>
    %95 = vector.extract_strided_slice %0 {offsets = [3, 0], sizes = [1, 128], strides = [1, 1]} : vector<24x128xf32> to vector<1x128xf32>
    %96 = vector.broadcast %95 : vector<1x128xf32> to vector<8x128xf32>
    %97 = arith.addf %94, %96 : vector<8x128xf32>
    %cst_41 = arith.constant dense<0xFF800000> : vector<8xf32>
    %98 = vector.multi_reduction <maximumf>, %97, %cst_41 [1] : vector<8x128xf32> to vector<8xf32>
    %99 = vector.shape_cast %98 : vector<8xf32> to vector<8x1xf32>
    %100 = vector.broadcast %99 : vector<8x1xf32> to vector<8x128xf32>
    %101 = arith.subf %97, %100 : vector<8x128xf32>
    %102 = math.exp %101 : vector<8x128xf32>
    %cst_42 = arith.constant dense<0.000000e+00> : vector<8xf32>
    %103 = vector.multi_reduction <add>, %102, %cst_42 [1] : vector<8x128xf32> to vector<8xf32>
    %104 = vector.shape_cast %103 : vector<8xf32> to vector<8x1xf32>
    %105 = tpu.reciprocal %104 {approx = true} : vector<8x1xf32> -> vector<8x1xf32>
    %106 = vector.broadcast %105 : vector<8x1xf32> to vector<8x128xf32>
    %107 = arith.mulf %102, %106 : vector<8x128xf32>
    %c0_43 = arith.constant 0 : index
    %c0_44 = arith.constant 0 : index
    %c0_45 = arith.constant 0 : index
    %108 = vector.load %arg6[%c0_43, %c0_44, %c0_45] : memref<1x8x128xf32, #tpu.memory_space<vmem>>, vector<1x8x128xf32>
    %109 = vector.shape_cast %108 : vector<1x8x128xf32> to vector<8x128xf32>
    %110 = vector.shape_cast %107 : vector<8x128xf32> to vector<1x8x128xf32>
    tpu.vector_store %arg6[%c0_43, %c0_44, %c0_45], %110 {strides = array<i32>} : memref<1x8x128xf32, #tpu.memory_space<vmem>>, vector<1x8x128xf32>,
    return
  }
  func.func @transform_0(%arg0: i32) -> (i32, i32, i32) {
    %c0_i32 = arith.constant 0 : i32
    %c0_i32_0 = arith.constant 0 : i32
    %c0_i32_1 = arith.constant 0 : i32
    return %arg0, %c0_i32, %c0_i32_0 : i32, i32, i32
  }
  func.func @transform_1(%arg0: i32) -> (i32, i32, i32, i32) {
    %c0_i32 = arith.constant 0 : i32
    %c0_i32_0 = arith.constant 0 : i32
    %c0_i32_1 = arith.constant 0 : i32
    %c0_i32_2 = arith.constant 0 : i32
    return %arg0, %c0_i32, %c0_i32_0, %c0_i32_1 : i32, i32, i32, i32
  }
  func.func @transform_2(%arg0: i32) -> (i32, i32) {
    %c0_i32 = arith.constant 0 : i32
    %c0_i32_0 = arith.constant 0 : i32
    %c0_i32_1 = arith.constant 0 : i32
    return %c0_i32, %c0_i32_0 : i32, i32
  }
  func.func @transform_3(%arg0: i32) -> (i32, i32, i32) {
    %c0_i32 = arith.constant 0 : i32
    %c0_i32_0 = arith.constant 0 : i32
    %c0_i32_1 = arith.constant 0 : i32
    %c0_i32_2 = arith.constant 0 : i32
    return %c0_i32, %c0_i32_0, %c0_i32_1 : i32, i32, i32
  }
  func.func @transform_4(%arg0: i32) -> (i32, i32) {
    %c0_i32 = arith.constant 0 : i32
    %c0_i32_0 = arith.constant 0 : i32
    %c0_i32_1 = arith.constant 0 : i32
    return %c0_i32, %c0_i32_0 : i32, i32
  }
  func.func @transform_5(%arg0: i32) -> (i32, i32, i32) {
    %c0_i32 = arith.constant 0 : i32
    %c0_i32_0 = arith.constant 0 : i32
    %c0_i32_1 = arith.constant 0 : i32
    return %arg0, %c0_i32, %c0_i32_0 : i32, i32, i32
  }
  func.func @transform_6(%arg0: i32) -> (i32, i32, i32, i32) {
    %c0_i32 = arith.constant 0 : i32
    %c0_i32_0 = arith.constant 0 : i32
    %c0_i32_1 = arith.constant 0 : i32
    %c0_i32_2 = arith.constant 0 : i32
    return %arg0, %c0_i32, %c0_i32_0, %c0_i32_1 : i32, i32, i32, i32
  }
}

</mosaic_0001>

<bundles_post_ra>
// kernel: fsmn_export_forward.1
= control target key start
LH: loop header
LB: loop body
LE: loop exit
PB: predicated region body
PF: predicated region fallthrough
CT: control target
= control target key end

     0   :  { %12 = vsyncpa [#allocation3], 0  ;;  %s1959_s0 = inlined_call_operand.vmem [shape: f32[2,8,32], index: 0, kind: input, shape index: {}]   ;;  %s1960_s1 = inlined_call_operand.vmem [shape: f32[2,2,8,128], index: 1, kind: input, shape index: {}, may-alias: {1,6}]   ;;  %s1961_s2 = inlined_call_operand.hbm [shape: bf16[32,128], index: 2, kind: input, shape index: {}]   ;;  %s1962_s3 = inlined_call_operand.hbm [shape: bf16[5,128,128], index: 3, kind: input, shape index: {}]   ;;  %s1963_s4 = inlined_call_operand.vmem [shape: f32[24,128], index: 4, kind: input, shape index: {}]   ;;  %s1964_s5 = inlined_call_operand.hbm [shape: f32[2,8,128], index: 5, kind: output, shape index: {0}]   ;;  %s1965_s6 = inlined_call_operand.vmem [shape: f32[2,2,8,128], index: 6, kind: output, shape index: {1}, may-alias: {1,6}]  }
   0x1   :  { %13 = vsyncpa [#allocation6], 0 }
   0x2   :  { %14 = vsyncpa [#allocation4], 0 }
   0x3   :  { %16 = vsyncpa [#allocation4 + $0x1], 0  ;;  %s1674_s21 = smov 0   ;;  %s1676_s22 = smov 0  }
   0x4   :  { %s1678_s23 = smov 0   ;;  %s1680_s24 = smov 0  }
   0x5 LB: > { %s1695_s25 = sadd.s32 4294967295, %s1630_s24   ;;  %s1173_s26 = sadd.s32 4294967294, %s1630_s24   ;;  %s1630_s24 = sphi %s1680_s24, %s1983_s24   ;;  %s1626_s23 = sphi %s1678_s23, %s1982_s23   ;;  %s1622_s22 = sphi %s1676_s22, %s1981_s22   ;;  %s1618_s21 = sphi %s1674_s21, %s1980_s21  }
   0x6   : > { %s1699_s27 = sadd.s32 1, %s1630_s24   ;;  %s144_s28 = sadd.s32 1, %s1626_s23 }
   0x7   : > { %s141_s29 = ssub.s32 %s1630_s24, %s1699_s27  ;;  %p154_p0 = scmp.ne.s32.totalorder %s1626_s23, %s1622_s22 }
   0x8   : > { %p142_p1 = scmp.eq.s32.totalorder %s141_s29, 0  ;;  %p155_p2 = scmp.eq.s32.totalorder %s1695_s25, 1 }
   0x9   : > { %p160_p3 = scmp.ne.s32.totalorder %s1622_s22, %s1618_s21  ;;  %p161_p4 = scmp.eq.s32.totalorder %s1173_s26, 1 }
   0xa   : > { %s1710_s30 = scalar_select %p142_p1, %s1626_s23, %s144_s28  }
   0xb   : > { %p1712_p5 = por %p155_p2, %p154_p0  ;;  %p1716_p6 = por %p161_p4, %p160_p3 }
   0xc   : > { %p1174_p7 = scmp.ge.s32.totalorder %s1630_s24, 1  ;;  %p194_p8 = scmp.lt.s32.totalorder %s1630_s24, 3 }
   0xd   : > { %s1969_s7 = scalar_select %p1712_p5, 1, 0 }
   0xe   : > { %s1970_s8 = scalar_select %p1716_p6, 1, 0 }
   0xf   : > { %p1966_p9 = scmp.eq.s32.totalorder %s1695_s25, 0  ;;  %p1723_p10 = pnand %p1174_p7, %p194_p8 }
  0x10   : > { %s1632_s10 = smov [#allocation2]   ;;  %s1633_s13 = smov [#allocation5]  }
  0x11   : > { %s1971_s9 = scalar_select %p1723_p10, 1, 0 }
  0x12   : > { %s206_s11 = sshll.u32 %s1632_s10, 4  ;;  %p1404_p11 = pneg %p1723_p10  ;;  %s207_s11 = int_to_ptr.vmem [resolvable:$true] %s206_s11 }
  0x13   : > { %s219_s14 = sshll.u32 %s1633_s13, 4  ;;  %s1504_s17 = scalar_lea.hbm %s1961_s2, 256  ;;  %s1735_s14 = int_to_ptr.vmem [resolvable:$true] %s219_s14 }
  0x14   : > { %p1731_p12 = pnand %p1966_p9, %p1404_p11  ;;  %p1505_p13 = scmp.ne.s32.totalorder %s1961_s2, %s1504_s17 }
  0x15   : > { %p1511_p3 = scmp.lt.u32.totalorder %s1504_s17, %s1961_s2 }
  0x16   : > { %p1506_p0 = pneg %p1731_p12 }
  0x18   : > { %p1507_p1 = pnand %p1506_p0, %p1505_p13 }
  0x1a   : > { %p1508_p2 = pneg %p1507_p1 }
  0x1c   : > { %p1513_p4 = pnand %p1511_p3, %p1508_p2 }
  0x1e   : > { %1516 = shalt.err (!%p1513_p4)
}
  0x1f   : > { %s1517_s28 = scalar_lea.vmem %s207_s11, 256  ;;  %p1525_p9 = scmp.lt.s32.totalorder %s207_s11, %s207_s11 }
  0x20   : > { %p1518_p7 = scmp.ne.s32.totalorder %s207_s11, %s1517_s28  ;;  %p1526_p6 = scmp.lt.s32.totalorder %s1517_s28, %s1517_s28 }
  0x22   : > { %p1520_p8 = pnand %p1518_p7, %p1506_p0  ;;  %p1527_p5 = por %p1526_p6, %p1525_p9 }
  0x24   : > { %p1521_p11 = pneg %p1520_p8 }
  0x26   : > { %p1528_p10 = pnand %p1527_p5, %p1521_p11 }
  0x28   : > { %1531 = shalt.err (!%p1528_p10)
}
  0x29   : > { %s1634_s29 = smov 64   ;;  %s1635_s10 = smov 4  }
  0x2a   : > { %1407 = dma.hbm_to_vmem [thread:$0]  (!%p1731_p12), %s1961_s2, 256, %s207_s11, [#allocation3], %s1634_s29, %s1634_s29, %s1635_s10  }
  0x2b   : > { %s1532_s18 = scalar_lea.hbm %s1962_s3, 5120 }
  0x2c   : > { %p1533_p13 = scmp.ne.s32.totalorder %s1962_s3, %s1532_s18  ;;  %p1539_p9 = scmp.lt.u32.totalorder %s1532_s18, %s1962_s3 }
  0x2e   : > { %p1535_p5 = pnand %p1533_p13, %p1506_p0 }
  0x30   : > { %p1536_p6 = pneg %p1535_p5 }
  0x32   : > { %p1541_p10 = pnand %p1539_p9, %p1536_p6 }
  0x34   : > { %1544 = shalt.err (!%p1541_p10)
}
  0x35   : > { %s1545_s11 = scalar_lea.vmem %s1735_s14, 5120  ;;  %p1553_p4 = scmp.lt.s32.totalorder %s1735_s14, %s1735_s14 }
  0x36   : > { %p1546_p1 = scmp.ne.s32.totalorder %s1735_s14, %s1545_s11  ;;  %p1554_p7 = scmp.lt.s32.totalorder %s1545_s11, %s1545_s11 }
  0x38   : > { %p1548_p2 = pnand %p1546_p1, %p1506_p0  ;;  %p1555_p8 = por %p1554_p7, %p1553_p4 }
  0x3a   : > { %p1549_p3 = pneg %p1548_p2 }
  0x3c   : > { %p1556_p11 = pnand %p1555_p8, %p1549_p3 }
  0x3e   : > { %1559 = shalt.err (!%p1556_p11)
}
  0x3f   : > { %1410 = dma.hbm_to_vmem [thread:$0]  (!%p1731_p12), %s1962_s3, 5120, %s1735_s14, [#allocation6], %s1634_s29, %s1634_s29, %s1635_s10  }
  0x40   : > { %p1973_p13 = scmp.ne.s32.totalorder %s1971_s9, 0 }
  0x41   : > { %p1974_p5 = scmp.eq.s32.totalorder (!%p1973_p13), %s1695_s25, 0 }
  0x42   : > { %253 = sbr.rel (%p1973_p13) target bundleno = 1736 (0x6c8), region = 40 }
  0x49   : > { %1605 = dma.done.wait (%p1974_p5), [#allocation3], 256   ;;  %p1975_p0 = pmov %p1974_p5 }
  0x4b   : > { %1607 = vsyncadd (%p1975_p0), [#allocation3], 4294967040  ;;  %p1976_p6 = pmov %p1975_p0 }
  0x4c   : > { %p1977_p9 = pmov %p1975_p0 }
  0x4d   : > { %1609 = dma.done.wait (%p1976_p6), [#allocation6], 5120  }
  0x4e   : > { %1611 = vsyncadd (%p1977_p9), [#allocation6], 4294962176  ;;  %p296_p10 = scmp.lt.s32.totalorder %s1695_s25, 1  ;;  %v1636_v0 = vmov 0.0   ;;  %vm1637_vm0 = vmmov 0   ;;  %v1458_v1 = vld [vmem:[#allocation2] sm:$0xff]   ;;  %v320_v17 = vlaneseq }
  0x4f   : > { %1286 = vmatprep.subr.bf16.mxu0 %v1636_v0  ;;  %1290 = vmatprep.mubr.msk.bf16.mxu0 %vm1637_vm0, %v1636_v0  ;;  %v1459_v2 = vld [vmem:[#allocation2 + $0x8] sm:$0xff]   ;;  %v1460_v4 = vld [vmem:[#allocation5] sm:$0xff]   ;;  %v1461_v6 = vld [vmem:[#allocation5 + $0x8] sm:$0xff]   ;;  %vm336_vm1 = vcmask 261120   ;;  %vm501_vm2 = vcmask 1042432   ;;  %vm515_vm3 = vcmask 1041408  }
  0x50   : > { %s1799_s9 = scalar_select %p296_p10, %s1695_s25, 1  ;;  %1294 = vmatprep.subr.bf16.mxu1 %v1636_v0  ;;  %1310 = vmatprep.mubr.msk.bf16.mxu1 %vm1637_vm0, %v1636_v0  ;;  %v1462_v7 = vld [vmem:[#allocation5 + $0x10] sm:$0xff]   ;;  %v1463_v8 = vld [vmem:[#allocation5 + $0x18] sm:$0xff]   ;;  %v1464_v9 = vld [vmem:[#allocation5 + $0x20] sm:$0xff]   ;;  %v321_v18 = vshrl.u32 %v320_v17, 7  ;;  %vm529_vm4 = vcmask 1040384  }
  0x51   : > { %1287 = vmatpush3.bf16.msra.mxu0 %v1458_v1  ;;  %1295 = vmatpush3.bf16.msra.mxu1 %v1460_v4  ;;  %v1465_v10 = vld [vmem:[#allocation5 + $0x28] sm:$0xff]   ;;  %v1466_v11 = vld [vmem:[#allocation5 + $0x30] sm:$0xff]   ;;  %v1467_v12 = vld [vmem:[#allocation5 + $0x38] sm:$0xff]   ;;  %s286_s29 = sand.u32 1, %s1622_s22   ;;  %s1233_s16 = sshll.u32 %s1695_s25, 7 }
  0x52   : > { %s1182_s12 = sshll.u32 %s1799_s9, 3  ;;  %1288 = vmatprep.subr.bf16.mxu0 %v1636_v0  ;;  %1296 = vmatprep.subr.bf16.mxu1 %v1636_v0  ;;  %v1468_v13 = vld [vmem:[#allocation5 + $0x40] sm:$0xff]   ;;  %v1469_v14 = vld [vmem:[#allocation5 + $0x48] sm:$0xff]   ;;  %v1470_v15 = vld [vmem:[#allocation5 + $0x50] sm:$0xff]   ;;  %v1824_v19 = vsub.s32 0, %v321_v18  ;;  %s1236_s18 = sshll.u32 %s1799_s9, 4 }
  0x53   : > { %s299_s10 = scalar_lea.vmem %s1959_s0, %s1182_s12  ;;  %v1471_v16 = vld [vmem:[#allocation5 + $0x58] sm:$0xff]   ;;  %v1829_v20 = vld [vmem:[%s1963_s4] sm:$0xff]  ;;  %v1472_v29 = vld [vmem:[#allocation5 + $0x60] sm:$0xff]   ;;  %s1852_s11 = scalar_lea.vmem %s1960_s1, %s1236_s18  ;;  %v1854_v40 = vsub.s32 1, %v321_v18  ;;  %v1858_v43 = vsub.s32 2, %v321_v18  ;;  %v1861_v46 = vsub.s32 3, %v321_v18 }
  0x54   : > { %v314_v3 = vld [vmem:[%s299_s10] sm:$0xff]  ;;  %v323_v21 = vrot.slane %v1829_v20, %v1824_v19  ;;  %v1473_v30 = vld [vmem:[#allocation5 + $0x68] sm:$0xff]   ;;  %v1475_v32 = vld [vmem:[#allocation5 + $0x78] sm:$0xff]   ;;  %s1867_s9 = scalar_lea.vmem %s1965_s6, %s1236_s18  ;;  %s1181_s10 = sshll.u32 %s286_s29, 3 }
  0x55   : > { %v315_v5 = vpack.c.bf16 %v314_v3, %v314_v3  ;;  %1289 = vmatpush3.bf16.msra.mxu0 %v1459_v2  ;;  %1297 = vmatpush3.bf16.msra.mxu1 %v1461_v6  ;;  %v1474_v31 = vld [vmem:[#allocation5 + $0x70] sm:$0xff]   ;;  %v1476_v33 = vld [vmem:[#allocation5 + $0x80] sm:$0xff]   ;;  %v1477_v34 = vld [vmem:[#allocation5 + $0x88] sm:$0xff]   ;;  %s288_s17 = scalar_lea.vmem [#allocation7], %s1181_s10  ;;  %s1917_s26 = scalar_lea.hbm %s1964_s5, %s1233_s16 }
  0x56   : > { %1314 = vmatprep.subr.bf16.mxu0 %v1636_v0  ;;  %1298 = vmatprep.subr.bf16.mxu1 %v1636_v0  ;;  %v1478_v35 = vld [vmem:[#allocation5 + $0x90] sm:$0xff]   ;;  %v1479_v36 = vld [vmem:[#allocation5 + $0x98] sm:$0xff]   ;;  %v1480_v37 = vld [vmem:[#allocation5 + $0xa0] sm:$0xff]   ;;  %s1052_s18 = sshll.u32 %s288_s17, 4  ;;  %s1034_s28 = scalar_lea.sflag [#allocation4], %s286_s29  ;;  %s1919_s18 = int_to_ptr.vmem [resolvable:$true] %s1052_s18 }
  0x57   : > { %v1481_v38 = vld [vmem:[#allocation5 + $0xa8] sm:$0xff]   ;;  %v312_v39 = vld [vmem:[%s1963_s4 + $0x8] sm:$0xff]  ;;  %v486_v42 = vld [vmem:[%s1852_s11] sm:$0xff]  ;;  %p1978_p1 = scmp.ne.s32.totalorder %s1969_s7, 0  ;;  %s1638_s25 = smov [#allocation7]  }
  0x58   : > { %1291 = vmatmul.mubr.msk.bf16.vlgmr.msra.gmra.mrb[0].mxu0 %vm336_vm1, %v315_v5  ;;  %v496_v41 = vrot.slane %v312_v39, %v1824_v19  ;;  %v510_v44 = vrot.slane %v312_v39, %v1854_v40  ;;  %v524_v47 = vrot.slane %v312_v39, %v1858_v43  ;;  %v491_v51 = vrot.slane %v312_v39, %v1861_v46  ;;  %s1564_s13 = sshll.u32 %s1638_s25, 4  ;;  %s1565_s13 = int_to_ptr.vmem [resolvable:$false] %s1564_s13 }
  0x59   : > { %1330 = vmatprep.mubr.msk.bf16.mxu0 %vm1637_vm0, %v1636_v0  ;;  %1299 = vmatpush3.bf16.msra.mxu1 %v1462_v7  ;;  %s1566_s15 = scalar_lea.vmem %s1565_s13, 256  ;;  %p1567_p4 = scmp.lt.s32.totalorder %s1919_s18, %s1565_s13 }
  0x5a   : > { %1300 = vmatprep.subr.bf16.mxu1 %v1636_v0  ;;  %1315 = vmatpush3.bf16.msra.mxu0 %v1468_v13  ;;  %v497_v45 = vmul.f32 %v496_v41, %v486_v42  ;;  %v511_v48 = vmul.f32 %v510_v44, %v486_v42  ;;  %v525_v54 = vmul.f32 %v524_v47, %v486_v42  ;;  %v1485_v13 = vld [vmem:[#allocation5 + $0xc8] sm:$0xff]  }
  0x5b   : > { %1316 = vmatprep.subr.bf16.mxu0 %v1636_v0 }
  0x5c   : > { %v502_v49 = vrot.slane %v497_v45, 5  ;;  %v516_v59 = vrot.slane %v511_v48, 6  ;;  %v530_v2 = vrot.slane %v525_v54, 7 }
  0x5d   : > { %1301 = vmatpush3.bf16.msra.mxu1 %v1463_v8 }
  0x5e   : > { %1302 = vmatprep.subr.bf16.mxu1 %v1636_v0  ;;  %1317 = vmatpush3.bf16.msra.mxu0 %v1469_v14  ;;  %v1486_v14 = vld [vmem:[#allocation5 + $0xd0] sm:$0xff]  }
  0x5f   : > { %1318 = vmatprep.subr.bf16.mxu0 %v1636_v0 }
  0x61   : > { %1303 = vmatpush3.bf16.msra.mxu1 %v1464_v9 }
  0x62   : > { %1304 = vmatprep.subr.bf16.mxu1 %v1636_v0  ;;  %1319 = vmatpush3.bf16.msra.mxu0 %v1470_v15  ;;  %v1487_v15 = vld [vmem:[#allocation5 + $0xd8] sm:$0xff]  }
  0x63   : > { %1320 = vmatprep.subr.bf16.mxu0 %v1636_v0 }
  0x65   : > { %1305 = vmatpush3.bf16.msra.mxu1 %v1465_v10  ;;  %v1482_v10 = vld [vmem:[#allocation5 + $0xb0] sm:$0xff]  }
  0x66   : > { %1306 = vmatprep.subr.bf16.mxu1 %v1636_v0  ;;  %1321 = vmatpush3.bf16.msra.mxu0 %v1471_v16  ;;  %v557_v16 = vrot.slane %v1829_v20, %v1854_v40 }
  0x67   : > { %1322 = vmatprep.subr.bf16.mxu0 %v1636_v0 }
  0x69   : > { %1307 = vmatpush3.bf16.msra.mxu1 %v1466_v11  ;;  %v1483_v11 = vld [vmem:[#allocation5 + $0xb8] sm:$0xff]  }
  0x6a   : > { %1308 = vmatprep.subr.bf16.mxu1 %v1636_v0  ;;  %1323 = vmatpush3.bf16.msra.mxu0 %v1472_v29  ;;  %v1491_v29 = vld [vmem:[#allocation5 + $0xf8] sm:$0xff]  }
  0x6b   : > { %1324 = vmatprep.subr.bf16.mxu0 %v1636_v0 }
  0x6d   : > { %1309 = vmatpush3.bf16.msra.mxu1 %v1467_v12  ;;  %v1484_v12 = vld [vmem:[#allocation5 + $0xc0] sm:$0xff]  }
  0x6e   : > { %1334 = vmatprep.subr.bf16.mxu1 %v1636_v0  ;;  %1325 = vmatpush3.bf16.msra.mxu0 %v1473_v30  ;;  %v1492_v30 = vld [vmem:[#allocation5 + $0x100] sm:$0xff]  }
  0x6f   : > { %1326 = vmatprep.subr.bf16.mxu0 %v1636_v0 }
  0x72   : > { %1327 = vmatpush3.bf16.msra.mxu0 %v1474_v31  ;;  %v1493_v31 = vld [vmem:[#allocation5 + $0x108] sm:$0xff]  }
  0x73   : > { %1328 = vmatprep.subr.bf16.mxu0 %v1636_v0 }
  0x76   : > { %1329 = vmatpush3.bf16.msra.mxu0 %v1475_v32  ;;  %v1494_v32 = vld [vmem:[#allocation5 + $0x110] sm:$0xff]  }
  0x77   : > { %1354 = vmatprep.subr.bf16.mxu0 %v1636_v0 }
 0x12b   : > { %v374_v22 = vpop.f32.mrb[0].mxu0 }
 0x12c   : > { %v375_v23 = vadd.f32 %v374_v22, %v323_v21  ;;  %v1292_v24 = vpop.f32.mrb[1].mxu0 }
 0x12d   : > { %v377_v25 = vpop.f32.mrb[2].mxu0 }
 0x12e   : > { %v380_v26 = vmax.f32 %v375_v23, 0.0  ;;  %v1293_v27 = vpop.f32.mrb[3].mxu0 }
 0x12f   : > { %v1489_v27 = vld [vmem:[#allocation5 + $0xe8] sm:$0xff]  }
 0x130   : > { %v381_v28 = vpack.c.bf16 %v380_v26, %v380_v26  ;;  %v1488_v26 = vld [vmem:[#allocation5 + $0xe0] sm:$0xff]  }
 0x132   : > { %1311 = vmatmul.mubr.bf16.vlgmr.msra.gmra.mrb[0].mxu1 %v381_v28  ;;  %v1490_v28 = vld [vmem:[#allocation5 + $0xf0] sm:$0xff]  }
 0x133   : > { %1350 = vmatprep.mubr.msk.bf16.mxu1 %vm1637_vm0, %v1636_v0  ;;  %1335 = vmatpush3.bf16.msra.mxu1 %v1476_v33  ;;  %v1495_v33 = vld [vmem:[#allocation5 + $0x118] sm:$0xff]  }
 0x134   : > { %1336 = vmatprep.subr.bf16.mxu1 %v1636_v0 }
 0x137   : > { %1337 = vmatpush3.bf16.msra.mxu1 %v1477_v34  ;;  %v1496_v34 = vld [vmem:[#allocation5 + $0x120] sm:$0xff]  }
 0x138   : > { %1338 = vmatprep.subr.bf16.mxu1 %v1636_v0 }
 0x13b   : > { %1339 = vmatpush3.bf16.msra.mxu1 %v1478_v35  ;;  %v1497_v35 = vld [vmem:[#allocation5 + $0x128] sm:$0xff]  }
 0x13c   : > { %1340 = vmatprep.subr.bf16.mxu1 %v1636_v0 }
 0x13f   : > { %1341 = vmatpush3.bf16.msra.mxu1 %v1479_v36  ;;  %v313_v36 = vld [vmem:[%s1963_s4 + $0x10] sm:$0xff] }
 0x140   : > { %1342 = vmatprep.subr.bf16.mxu1 %v1636_v0 }
 0x143   : > { %1343 = vmatpush3.bf16.msra.mxu1 %v1480_v37  ;;  %v765_v37 = vrot.slane %v313_v36, %v1824_v19 }
 0x144   : > { %1344 = vmatprep.subr.bf16.mxu1 %v1636_v0 }
 0x147   : > { %1345 = vmatpush3.bf16.msra.mxu1 %v1481_v38  ;;  %v778_v38 = vrot.slane %v313_v36, %v1854_v40 }
 0x148   : > { %1346 = vmatprep.subr.bf16.mxu1 %v1636_v0 }
 0x14b   : > { %1347 = vmatpush3.bf16.msra.mxu1 %v1482_v10 }
 0x14c   : > { %1348 = vmatprep.subr.bf16.mxu1 %v1636_v0 }
 0x14f   : > { %1349 = vmatpush3.bf16.msra.mxu1 %v1483_v11 }
 0x150   : > { %1374 = vmatprep.subr.bf16.mxu1 %v1636_v0 }
 0x205   : > { %v480_v50 = vpop.f32.mrb[0].mxu1 }
 0x206   : > { %487 = vst [vmem:[%s1867_s9] sm:$0xff] %v480_v50  ;;  %v498_v52 = vmul.f32 %v496_v41, %v480_v50  ;;  %v512_v53 = vmul.f32 %v510_v44, %v480_v50  ;;  %v526_v55 = vmul.f32 %v524_v47, %v480_v50  ;;  %v1312_v56 = vpop.f32.mrb[1].mxu1  ;;  %v492_v62 = vmul.f32 %v491_v51, %v480_v50 }
 0x207   : > { %v483_v57 = vpop.f32.mrb[2].mxu1  ;;  %v791_v41 = vrot.slane %v313_v36, %v1858_v43  ;;  %v760_v47 = vrot.slane %v313_v36, %v1861_v46 }
 0x208   : > { %v503_v58 = vrot.slane %v498_v52, 5  ;;  %v517_v60 = vrot.slane %v512_v53, 6  ;;  %v1313_v61 = vpop.f32.mrb[3].mxu1  ;;  %v531_v1 = vrot.slane %v526_v55, 7 }
 0x20a   : > { %v504_v63 = vsel %vm501_vm2, %v502_v49, %v503_v58  ;;  %v518_v4 = vsel %vm515_vm3, %v516_v59, %v517_v60  ;;  %v532_v6 = vsel %vm529_vm4, %v530_v2, %v531_v1 }
 0x20b   : > { %v506_v3 = vadd.f32 %v504_v63, %v492_v62 }
 0x20d   : > { %v520_v5 = vadd.f32 %v518_v4, %v506_v3  ;;  %v1214_v39 = vld [vmem:[%s1852_s11 + $0x8] sm:$0xff]  ;;  %s1560_s11 = scalar_lea.vmem %s1919_s18, 128 }
 0x20e   : > { %v766_v42 = vmul.f32 %v1214_v39, %v765_v37  ;;  %v779_v44 = vmul.f32 %v1214_v39, %v778_v38  ;;  %v792_v52 = vmul.f32 %v1214_v39, %v791_v41  ;;  %p1561_p12 = scmp.ne.s32.totalorder %s1919_s18, %s1560_s11  ;;  %p1568_p7 = scmp.lt.s32.totalorder %s1566_s15, %s1560_s11 }
 0x20f   : > { %v534_v7 = vadd.f32 %v532_v6, %v520_v5  ;;  %v1498_v5 = vld [vmem:[#allocation5 + $0x130] sm:$0xff]   ;;  %v1499_v6 = vld [vmem:[#allocation5 + $0x138] sm:$0xff]  }
 0x210   : > { %v770_v54 = vrot.slane %v766_v42, 5  ;;  %v783_v19 = vrot.slane %v779_v44, 6  ;;  %v796_v62 = vrot.slane %v792_v52, 7  ;;  %p1562_p2 = pnand %p1561_p12, %p1978_p1  ;;  %p1569_p8 = por %p1568_p7, %p1567_p4 }
 0x211   : > { %v535_v8 = vadd.f32 %v534_v7, %v480_v50  ;;  %v823_v7 = vrot.slane %v1829_v20, %v1858_v43 }
 0x212   : > { %p1563_p3 = pneg %p1562_p2 }
 0x213   : > { %v536_v9 = vpack.c.bf16 %v535_v8, %v535_v8 }
 0x214   : > { %p1570_p11 = pnand %p1569_p8, %p1563_p3 }
 0x215   : > { %1331 = vmatmul.mubr.bf16.vlgmr.msra.gmra.mrb[4].mxu0 %v536_v9 }
 0x216   : > { %1370 = vmatprep.mubr.msk.bf16.mxu0 %vm1637_vm0, %v1636_v0  ;;  %1355 = vmatpush3.bf16.msra.mxu0 %v1484_v12 }
 0x217   : > { %1356 = vmatprep.subr.bf16.mxu0 %v1636_v0 }
 0x21a   : > { %1357 = vmatpush3.bf16.msra.mxu0 %v1485_v13 }
 0x21b   : > { %1358 = vmatprep.subr.bf16.mxu0 %v1636_v0 }
 0x21e   : > { %1359 = vmatpush3.bf16.msra.mxu0 %v1486_v14 }
 0x21f   : > { %1360 = vmatprep.subr.bf16.mxu0 %v1636_v0 }
 0x222   : > { %1361 = vmatpush3.bf16.msra.mxu0 %v1487_v15  ;;  %v934_v15 = vrot.slane %v1829_v20, %v1861_v46 }
 0x223   : > { %1362 = vmatprep.subr.bf16.mxu0 %v1636_v0 }
 0x226   : > { %1363 = vmatpush3.bf16.msra.mxu0 %v1488_v26 }
 0x227   : > { %1364 = vmatprep.subr.bf16.mxu0 %v1636_v0 }
 0x22a   : > { %1365 = vmatpush3.bf16.msra.mxu0 %v1489_v27 }
 0x22b   : > { %1366 = vmatprep.subr.bf16.mxu0 %v1636_v0 }
 0x22e   : > { %1367 = vmatpush3.bf16.msra.mxu0 %v1490_v28 }
 0x22f   : > { %1368 = vmatprep.subr.bf16.mxu0 %v1636_v0 }
 0x232   : > { %1369 = vmatpush3.bf16.msra.mxu0 %v1491_v29 }
 0x2e8   : > { %v640_v17 = vpop.f32.mrb[4].mxu0 }
 0x2e9   : > { %v641_v18 = vadd.f32 %v640_v17, %v557_v16  ;;  %v1332_v21 = vpop.f32.mrb[5].mxu0 }
 0x2ea   : > { %v643_v22 = vpop.f32.mrb[6].mxu0 }
 0x2eb   : > { %v646_v23 = vmax.f32 %v641_v18, 0.0  ;;  %v1333_v24 = vpop.f32.mrb[7].mxu0 }
 0x2ed   : > { %v647_v25 = vpack.c.bf16 %v646_v23, %v646_v23 }
 0x2ef   : > { %1351 = vmatmul.mubr.bf16.vlgmr.msra.gmra.mrb[4].mxu1 %v647_v25 }
 0x2f0   : > { %1390 = vmatprep.mubr.msk.bf16.mxu1 %vm1637_vm0, %v1636_v0  ;;  %1375 = vmatpush3.bf16.msra.mxu1 %v1492_v30 }
 0x2f1   : > { %1376 = vmatprep.subr.bf16.mxu1 %v1636_v0 }
 0x2f4   : > { %1377 = vmatpush3.bf16.msra.mxu1 %v1493_v31 }
 0x2f5   : > { %1378 = vmatprep.subr.bf16.mxu1 %v1636_v0 }
 0x2f8   : > { %1379 = vmatpush3.bf16.msra.mxu1 %v1494_v32 }
 0x2f9   : > { %1380 = vmatprep.subr.bf16.mxu1 %v1636_v0 }
 0x2fc   : > { %1381 = vmatpush3.bf16.msra.mxu1 %v1495_v33 }
 0x2fd   : > { %1382 = vmatprep.subr.bf16.mxu1 %v1636_v0 }
 0x300   : > { %1383 = vmatpush3.bf16.msra.mxu1 %v1496_v34 }
 0x301   : > { %1384 = vmatprep.subr.bf16.mxu1 %v1636_v0 }
 0x304   : > { %1385 = vmatpush3.bf16.msra.mxu1 %v1497_v35 }
 0x305   : > { %1386 = vmatprep.subr.bf16.mxu1 %v1636_v0 }
 0x308   : > { %1387 = vmatpush3.bf16.msra.mxu1 %v1498_v5 }
 0x309   : > { %1388 = vmatprep.subr.bf16.mxu1 %v1636_v0 }
 0x30c   : > { %1389 = vmatpush3.bf16.msra.mxu1 %v1499_v6 }
 0x3c2   : > { %v747_v45 = vpop.f32.mrb[4].mxu1 }
 0x3c3   : > { %1215 = vst [vmem:[%s1867_s9 + $0x8] sm:$0xff] %v747_v45  ;;  %v767_v48 = vmul.f32 %v765_v37, %v747_v45  ;;  %v780_v49 = vmul.f32 %v778_v38, %v747_v45  ;;  %v793_v50 = vmul.f32 %v791_v41, %v747_v45  ;;  %v1352_v51 = vpop.f32.mrb[5].mxu1  ;;  %v761_v57 = vmul.f32 %v760_v47, %v747_v45 }
 0x3c4   : > { %v750_v53 = vpop.f32.mrb[6].mxu1 }
 0x3c5   : > { %v771_v55 = vrot.slane %v767_v48, 5  ;;  %v784_v56 = vrot.slane %v780_v49, 6  ;;  %v1353_v40 = vpop.f32.mrb[7].mxu1  ;;  %v797_v59 = vrot.slane %v793_v50, 7 }
 0x3c7   : > { %v772_v58 = vsel %vm501_vm2, %v770_v54, %v771_v55  ;;  %v785_v60 = vsel %vm515_vm3, %v783_v19, %v784_v56  ;;  %v798_v1 = vsel %vm529_vm4, %v796_v62, %v797_v59 }
 0x3c8   : > { %v774_v61 = vadd.f32 %v772_v58, %v761_v57 }
 0x3ca   : > { %v787_v63 = vadd.f32 %v785_v60, %v774_v61 }
 0x3cc   : > { %v800_v2 = vadd.f32 %v798_v1, %v787_v63 }
 0x3ce   : > { %v801_v3 = vadd.f32 %v800_v2, %v747_v45 }
 0x3d0   : > { %v802_v4 = vpack.c.bf16 %v801_v3, %v801_v3 }
 0x3d2   : > { %1371 = vmatmul.mubr.bf16.vlgmr.msra.gmra.mrb[8].mxu0 %v802_v4 }
 0x4a5   : > { %v906_v8 = vpop.f32.mrb[8].mxu0 }
 0x4a6   : > { %v907_v9 = vadd.f32 %v906_v8, %v823_v7  ;;  %v1372_v10 = vpop.f32.mrb[9].mxu0 }
 0x4a7   : > { %v909_v11 = vpop.f32.mrb[10].mxu0 }
 0x4a8   : > { %v912_v12 = vmax.f32 %v907_v9, 0.0  ;;  %v1373_v13 = vpop.f32.mrb[11].mxu0 }
 0x4aa   : > { %v913_v14 = vpack.c.bf16 %v912_v12, %v912_v12 }
 0x4ac   : > { %1391 = vmatmul.mubr.bf16.vlgmr.msra.gmra.mrb[8].mxu1 %v913_v14 }
 0x57f   : > { %v1017_v16 = vpop.f32.mrb[8].mxu1 }
 0x580   : > { %v1018_v0 = vadd.f32 %v1017_v16, %v934_v15  ;;  %v1392_v17 = vpop.f32.mrb[9].mxu1 }
 0x581   : > { %v1020_v18 = vpop.f32.mrb[10].mxu1 }
 0x582   : > { %1023 = vmax.xlane.f32.xlu0 %v1018_v0  ;;  %v1393_v21 = vpop.f32.mrb[11].mxu1 }
 0x60f   : > { %v1024_v43 = vpop.xlane.xlu0 %1023 }
 0x610   : > { %v1025_v22 = vsub.f32 %v1018_v0, %v1024_v43 }
 0x612   : > { %v1026_v23 = vmul.f32 1.442695, %v1025_v22 }
 0x614   : > { %1500 = vpow2.f32 %v1026_v23 }
 0x61e   : > { %v1501_v24 = vpop.eup %1500 }
 0x61f   : > { %1028 = vadd.xlane.f32.xlu0 %v1501_v24 }
 0x6ac   : > { %v1029_v25 = vpop.xlane.xlu0 %1028 }
 0x6ad   : > { %1502 = vrcp.f32 %v1029_v25 }
 0x6b7   : > { %v1503_v20 = vpop.eup %1502 }
 0x6b8   : > { %v1031_v46 = vmul.f32 %v1503_v20, %v1501_v24 }
 0x6ba   : > { %1032 = vst [vmem:[%s288_s17] sm:$0xff] %v1031_v46 }
 0x6bb   : > { %1573 = shalt.err (!%p1570_p11)
}
 0x6bc   : > { %s1574_s9 = scalar_lea.hbm %s1917_s26, 128  ;;  %s1578_s29 = scalar_lea.hbm %s1964_s5, 256 }
 0x6bd   : > { %p1575_p13 = scmp.ne.s32.totalorder %s1917_s26, %s1574_s9  ;;  %p1579_p6 = scmp.lt.u32.totalorder %s1917_s26, %s1964_s5 }
 0x6be   : > { %p1580_p9 = scmp.lt.u32.totalorder %s1578_s29, %s1574_s9  ;;  %p1582_p12 = scmp.lt.u32.totalorder %s1574_s9, %s1917_s26 }
 0x6bf   : > { %p1576_p5 = pnand %p1575_p13, %p1978_p1 }
 0x6c0   : > { %p1581_p10 = por %p1580_p9, %p1579_p6 }
 0x6c1   : > { %p1577_p0 = pneg %p1576_p5 }
 0x6c2   : > { %p1583_p2 = por %p1582_p12, %p1581_p10 }
 0x6c4   : > { %p1584_p3 = pnand %p1583_p2, %p1577_p0 }
 0x6c6   : > { %1587 = shalt.err (!%p1584_p3)
}
 0x6c7   : > { %1402 = dma.vmem_to_hbm [thread:$0]  (%p1978_p1), %s1919_s18, 128, %s1917_s26, %s1034_s28  }
 0x6c8 PF: > { %p1419_p4 = scmp.ge.s32.totalorder %s1630_s24, 2  ;;  %s1067_s17 = sand.u32 1, %s1618_s21  }
 0x6c9   : > { %p1979_p7 = scmp.ne.s32.totalorder %s1970_s8, 0  ;;  %s1068_s19 = scalar_lea.sflag [#allocation4], %s1067_s17 }
 0x6cb   : > { %p1412_p8 = pnand %p1419_p4, %p1979_p7 }
 0x6cd   : > { %1613 = dma.done.wait (!%p1412_p8), %s1068_s19, 128  }
 0x6ce   : > { %1615 = vsyncadd (!%p1412_p8), %s1068_s19, 4294967168  ;;  %p19_p11 = scmp.ge.s32.totalorder %s1699_s27, 4   ;;  %s1980_s21 = smov %s1622_s22 }
 0x6cf   : > { %s1981_s22 = smov %s1626_s23  ;;  %s1982_s23 = smov %s1710_s30 }
 0x6d0   : > { %s1983_s24 = smov %s1699_s27  ;;  %21 = sbr.rel (!%p19_p11) target bundleno = 5 (0x5), region = 105 }
 0x6d7   :  { %1081 = vsyncpa [#allocation3], 1 }
 0x6d8   :  { %1083 = vsyncpa [#allocation3 + $0x1], 1 }
 0x6d9   :  { %1084 = vsyncpa [#allocation6], 1 }
 0x6da   :  { %1085 = vsyncpa [#allocation4], 1 }
 0x6db   :  { %1087 = vsyncpa [#allocation4 + $0x1], 1 }

</bundles_post_ra>
